<compile_context>
chip_gen: v5e
topology: v5e:2x2
jax: 0.10.0
libtpu: 0.0.40
codegen_flags: <defaults>
</compile_context>

<pallas_src>
import functools

import jax
import jax.numpy as jnp
import numpy as np
from jax.experimental import pallas as pl
from jax.experimental.pallas import tpu as pltpu


# -----------------------------------------------------------------------------
# Kernel 1: series_decomp  (moving average with replicate padding + residual)
#   One grid step per batch row; padding built in VMEM values only (no HBM
#   xpad).  cumsum path for large moving_avg kernels.
# -----------------------------------------------------------------------------
def _decomp_kernel(x_ref, res_ref, mean_ref, *, kernel_size):
    L, C = x_ref.shape
    pad = (kernel_size - 1) // 2
    x = x_ref[...].astype(jnp.float32)                        # (L, C)

    # replicate padding, values only (no HBM materialization)
    front = jnp.broadcast_to(x[:1, :], (pad, C))
    back = jnp.broadcast_to(x[-1:, :], (pad, C))
    xp = jnp.concatenate([front, x, back], axis=0)            # (L + k - 1, C)

    if kernel_size <= 8:
        acc = xp[0:L, :]
        for o in range(1, kernel_size):
            acc = acc + xp[o:o + L, :]
    else:
        # prefix-sum formulation: 2 passes instead of k
        csum = jnp.cumsum(xp, axis=0)
        upper = csum[kernel_size - 1:, :]                     # (L, C)
        lower = jnp.concatenate(
            [jnp.zeros_like(csum[:1, :]), csum[:L - 1, :]], axis=0)
        acc = upper - lower

    mean = acc * (1.0 / kernel_size)
    mean_ref[...] = mean.astype(mean_ref.dtype)
    res_ref[...] = (x - mean).astype(res_ref.dtype)


def series_decomp(x, kernel_size):
    """x: (B, L, C) -> (seasonal, trend), both (B, L, C)."""
    B, L, C = x.shape
    kernel = functools.partial(_decomp_kernel, kernel_size=kernel_size)
    spec = pl.BlockSpec((None, L, C), lambda b: (b, 0, 0))
    res, mean = pl.pallas_call(
        kernel,
        out_shape=(
            jax.ShapeDtypeStruct((B, L, C), x.dtype),
            jax.ShapeDtypeStruct((B, L, C), x.dtype),
        ),
        grid=(B,),
        in_specs=[spec],
        out_specs=(pl.BlockSpec((None, L, C), lambda b: (b, 0, 0)),
                   pl.BlockSpec((None, L, C), lambda b: (b, 0, 0))),
        compiler_params=pltpu.CompilerParams(
            dimension_semantics=("parallel",)),
    )(x)
    return res, mean


def series_decomp_reference(x, kernel_size):
    pad = (kernel_size - 1) // 2
    front = jnp.repeat(x[:, :1, :], pad, axis=1)
    end = jnp.repeat(x[:, -1:, :], pad, axis=1)
    xp = jnp.concatenate([front, x, end], axis=1)
    L = x.shape[1]
    windows = jnp.stack([xp[:, o:o + L, :] for o in range(kernel_size)], axis=0)
    mean = jnp.mean(windows, axis=0)
    return x - mean, mean


# -----------------------------------------------------------------------------
# Kernel 2: ReconsModel  (repeat_interleave -> 1-layer LSTM -> Linear)
#   All batch rows of a block run through the recurrence together:
#     x_proj: (BB, 4Hp) once (input is the repeated hn, identical per step)
#     per step: gates = x_proj + h @ whh ; h,c carried as loop values (vregs)
#     h_t stored as a dense (BB, Hp) tile into hall[(t)]
#     epilogue: per-timestep lane-reduce vs wfc -> (BB, T) single dense store
#   Gate layout (packed at param-pack time): [i | f | o | g], each in its own
#   128-lane block, so sigmoid covers one contiguous 3*Hp slice.
# -----------------------------------------------------------------------------
def _recons_kernel(hn_ref, wih_ref, whh_ref, b_ref, wfc_ref, bfc_ref,
                   out_ref, hall_scr, *, T, Hp, unroll):
    # hn_ref : (BB, in_dim)  [matmul dtype]     wih_ref: (in_dim, 4*Hp)
    # whh_ref: (Hp, 4*Hp)    b_ref: (1, 4*Hp) f32
    # wfc_ref: (1, Hp) f32   bfc_ref: (1, 1) f32
    # out_ref: (BB, T) f32   hall_scr: (T, BB, Hp) f32 (NOT zero-initialized)
    BB = out_ref.shape[0]

    # shared across all timesteps (input is the repeated hn)
    x_proj = jnp.dot(hn_ref[...], wih_ref[...],
                     preferred_element_type=jnp.float32) + b_ref[...]

    def step(t, carry):
        h, c = carry
        gates = x_proj + jnp.dot(h.astype(whh_ref.dtype), whh_ref[...],
                                 preferred_element_type=jnp.float32)
        # packed gate order: i, f, o (sigmoid group) | g (tanh)
        sig = jax.nn.sigmoid(gates[:, :3 * Hp])
        i_g = sig[:, 0 * Hp:1 * Hp]
        f_g = sig[:, 1 * Hp:2 * Hp]
        o_g = sig[:, 2 * Hp:3 * Hp]
        g_g = jnp.tanh(gates[:, 3 * Hp:4 * Hp])
        c = f_g * c + i_g * g_g
        h = o_g * jnp.tanh(c)
        hall_scr[t] = h                      # dense (BB, Hp) tile store
        return (h, c)

    init = (jnp.zeros((BB, Hp), jnp.float32),
            jnp.zeros((BB, Hp), jnp.float32))
    jax.lax.fori_loop(0, T, step, init, unroll=unroll)

    # fc epilogue: y[b, t] = <hall[t, b, :], wfc> + bfc   (no transpose, no
    # oversized/zeroed scratch; output has exactly T lanes)
    wfc = wfc_ref[...]                                        # (1, Hp)
    cols = [jnp.sum(hall_scr[t] * wfc, axis=-1, keepdims=True)
            for t in range(T)]                                # T x (BB, 1)
    y = jnp.concatenate(cols, axis=-1) + bfc_ref[...]         # (BB, T)
    out_ref[...] = y.astype(out_ref.dtype)


def recons_model_forward(hn, params, window_size, *, num_row_blocks=1):
    """hn: (B, 512) -> (B, window_size, 1).

    num_row_blocks: 1 on v5e/v6e (single TensorCore), 2 on v7x to split the
    batch rows across the two TensorCores via the "parallel" grid axis.
    """
    B, in_dim = hn.shape
    Hp, four_hp = params["whh_t"].shape
    T = int(window_size)
    NB = max(1, int(num_row_blocks))
    mdt = params["wih_t"].dtype

    if NB == 1:
        BB, Bp = B, B
        hn_p = hn.astype(mdt)
    else:
        BB = ((pl.cdiv(B, NB) + 7) // 8) * 8     # sublane-aligned row blocks
        Bp = NB * BB
        hn_p = jnp.zeros((Bp, in_dim), mdt).at[:B].set(hn.astype(mdt))

    unroll = T if T <= 16 else 8                 # guard full unroll (perf rev)
    kernel = functools.partial(_recons_kernel, T=T, Hp=Hp, unroll=unroll)

    out = pl.pallas_call(
        kernel,
        out_shape=jax.ShapeDtypeStruct((Bp, T), jnp.float32),
        grid=(NB,),
        in_specs=[
            pl.BlockSpec((BB, in_dim), lambda nb: (nb, 0)),    # hn rows
            pl.BlockSpec((in_dim, four_hp), lambda nb: (0, 0)),  # wih_t
            pl.BlockSpec((Hp, four_hp), lambda nb: (0, 0)),    # whh_t
            pl.BlockSpec((1, four_hp), lambda nb: (0, 0)),     # bias
            pl.BlockSpec((1, Hp), lambda nb: (0, 0)),          # wfc row
            pl.BlockSpec((1, 1), lambda nb: (0, 0)),           # bfc
        ],
        out_specs=pl.BlockSpec((BB, T), lambda nb: (nb, 0)),
        scratch_shapes=[
            pltpu.VMEM((T, BB, Hp), jnp.float32),  # per-step hidden states
        ],
        compiler_params=pltpu.CompilerParams(
            dimension_semantics=("parallel",)),    # v7x: row blocks -> 2 TCs
    )(hn_p, params["wih_t"], params["whh_t"], params["b"],
      params["wfc_row"], params["bfc"])

    return out[:B, :, None]                        # (B, T, 1)


# -----------------------------------------------------------------------------
# Pure-JAX reference for the recons head (f32, PyTorch-layout params)
# -----------------------------------------------------------------------------
def recons_model_reference(hn, raw, window_size):
    H = raw["whh"].shape[1]
    B = hn.shape[0]
    wih_t = raw["wih"].T
    whh_t = raw["whh"].T
    b = (raw["b_ih"] + raw["b_hh"])[None, :]
    x_proj = hn @ wih_t + b

    def step(carry, _):
        h, c = carry
        gates = x_proj + h @ whh_t
        i = jax.nn.sigmoid(gates[:, :H])
        f = jax.nn.sigmoid(gates[:, H:2 * H])
        g = jnp.tanh(gates[:, 2 * H:3 * H])
        o = jax.nn.sigmoid(gates[:, 3 * H:])
        c = f * c + i * g
        h = o * jnp.tanh(c)
        y = h @ raw["wfc"].T + raw["bfc"][None, :]
        return (h, c), y

    init = (jnp.zeros((B, H), jnp.float32), jnp.zeros((B, H), jnp.float32))
    _, ys = jax.lax.scan(step, init, None, length=window_size)
    return jnp.transpose(ys, (1, 0, 2))


# -----------------------------------------------------------------------------
# Model.forward (implementable portion)
# -----------------------------------------------------------------------------
def model_forward(x_enc, x_mark_enc, x_dec, x_mark_dec, enc_out, params,
                  *, seq_len, label_len, pred_len, moving_avg_k):
    del x_mark_enc, x_mark_dec  # consumed only by the (unavailable) embeddings
    mean = jnp.tile(jnp.mean(x_enc, axis=1, keepdims=True), (1, pred_len, 1))
    zeros = jnp.zeros((x_dec.shape[0], pred_len, x_dec.shape[2]), x_dec.dtype)
    seasonal_init, trend_init = series_decomp(x_enc, moving_avg_k)
    trend_init = jnp.concatenate([trend_init[:, -label_len:, :], mean], axis=1)
    seasonal_init = jnp.concatenate([seasonal_init[:, -label_len:, :], zeros], axis=1)

    # TODO(synk): enc_embedding / encoder / dec_embedding / decoder bodies were
    # not provided; enc_out is supplied directly and dec_out is not produced.
    hn = enc_out[:, -1, :]                       # (B, d_model=512)
    recons_out = recons_model_forward(hn, params, seq_len)
    return recons_out, trend_init, seasonal_init


# -----------------------------------------------------------------------------
# Parameter init (PyTorch layout) + packing into the kernel layout
#   ReconsModel: LSTM(512 -> 64, 1 layer) + Linear(64 -> 1)
# -----------------------------------------------------------------------------
def init_recons_params(key, in_dim=512, hid_dim=64, out_dim=1):
    ks = jax.random.split(key, 6)
    s = 1.0 / np.sqrt(hid_dim)
    wih = jax.random.uniform(ks[0], (4 * hid_dim, in_dim), jnp.float32, -s, s)
    whh = jax.random.uniform(ks[1], (4 * hid_dim, hid_dim), jnp.float32, -s, s)
    b_ih = jax.random.uniform(ks[2], (4 * hid_dim,), jnp.float32, -s, s)
    b_hh = jax.random.uniform(ks[3], (4 * hid_dim,), jnp.float32, -s, s)
    wfc = jax.random.uniform(ks[4], (out_dim, hid_dim), jnp.float32, -s, s)
    bfc = jax.random.uniform(ks[5], (out_dim,), jnp.float32, -s, s)
    return {"wih": wih, "whh": whh, "b_ih": b_ih, "b_hh": b_hh,
            "wfc": wfc, "bfc": bfc}


def pack_recons_params(raw, *, gate_pad=128, matmul_dtype=jnp.bfloat16):
    """Transpose, permute gates to (i, f, o, g) and pad each to `gate_pad` lanes.

    matmul_dtype: bf16 for v6e/v7x MXU fast path; use f32 on v5e or for long
    windows (removes per-step h cast + accumulated rounding).
    """
    wih, whh = raw["wih"], raw["whh"]
    H = whh.shape[1]
    Hp = max(gate_pad, ((H + 127) // 128) * 128)
    # PyTorch raw gate order along 4H axis: [i, f, g, o]; kernel wants [i, f, o, g]
    perm = (0, 1, 3, 2)

    def pad_gate_cols(w_t):  # (rows, 4H) -> (rows, 4Hp), gate-permuted + padded
        rows = w_t.shape[0]
        out = jnp.zeros((rows, 4 * Hp), jnp.float32)
        for nb, rg in enumerate(perm):
            out = out.at[:, nb * Hp:nb * Hp + H].set(w_t[:, rg * H:(rg + 1) * H])
        return out

    wih_t = pad_gate_cols(wih.T)                                   # (in, 4Hp)
    whh_t = jnp.zeros((Hp, 4 * Hp), jnp.float32).at[:H, :].set(
        pad_gate_cols(whh.T))                                      # (Hp, 4Hp)
    b = pad_gate_cols((raw["b_ih"] + raw["b_hh"])[None, :])        # (1, 4Hp)
    wfc_row = jnp.zeros((raw["wfc"].shape[0], Hp),
                        jnp.float32).at[:, :H].set(raw["wfc"])     # (1, Hp)
    return {
        "wih_t": wih_t.astype(matmul_dtype),
        "whh_t": whh_t.astype(matmul_dtype),
        "b": b,                          # f32: elementwise path stays f32
        "wfc_row": wfc_row,              # f32: fc epilogue stays f32
        "bfc": raw["bfc"][None, :],      # (1, 1) f32
    }


if __name__ == "__main__":
    # Small, consistent shapes
    B, seq_len, label_len, pred_len = 2, 8, 4, 4
    enc_in, mark_dim, d_model, moving_avg_k = 4, 4, 512, 5

    key = jax.random.PRNGKey(0)
    k1, k2, k3, k4, k5, kp = jax.random.split(key, 6)
    x_enc = jax.random.normal(k1, (B, seq_len, enc_in), jnp.float32)
    x_mark_enc = jax.random.normal(k2, (B, seq_len, mark_dim), jnp.float32)
    x_dec = jax.random.normal(k3, (B, label_len + pred_len, enc_in), jnp.float32)
    x_mark_dec = jax.random.normal(k4, (B, label_len + pred_len, mark_dim), jnp.float32)
    enc_out = jax.random.normal(k5, (B, seq_len, d_model), jnp.float32)

    raw = init_recons_params(kp, in_dim=d_model, hid_dim=64, out_dim=1)
    params_bf16 = pack_recons_params(raw, matmul_dtype=jnp.bfloat16)  # v6e/v7x fast path
    params_f32 = pack_recons_params(raw, matmul_dtype=jnp.float32)    # v5e / strict path

    recons_out, trend_init, seasonal_init = model_forward(
        x_enc, x_mark_enc, x_dec, x_mark_dec, enc_out, params_bf16,
        seq_len=seq_len, label_len=label_len, pred_len=pred_len,
        moving_avg_k=moving_avg_k)
    jax.block_until_ready((recons_out, trend_init, seasonal_init))

    # --- correctness checks against pure-JAX references ---
    hn = enc_out[:, -1, :]
    ref = recons_model_reference(hn, raw, seq_len)

    # kernel structure check with f32 MXU operands (tight tolerance)
    out_f32 = recons_model_forward(hn, params_f32, seq_len)
    np.testing.assert_allclose(np.asarray(out_f32), np.asarray(ref),
                               atol=2e-3, rtol=2e-3)
    # bf16-operand path (f32 accumulation) — looser tolerance
    np.testing.assert_allclose(np.asarray(recons_out), np.asarray(ref),
                               atol=2e-2, rtol=2e-2)

    # series decomposition check
    sd_ref_res, sd_ref_mean = series_decomp_reference(x_enc, moving_avg_k)
    sd_res, sd_mean = series_decomp(x_enc, moving_avg_k)
    np.testing.assert_allclose(np.asarray(sd_mean), np.asarray(sd_ref_mean),
                               atol=1e-5, rtol=1e-5)
    np.testing.assert_allclose(np.asarray(sd_res), np.asarray(sd_ref_res),
                               atol=1e-5, rtol=1e-5)

    assert recons_out.shape == (B, seq_len, 1)
    assert trend_init.shape == (B, label_len + pred_len, enc_in)
    assert seasonal_init.shape == (B, label_len + pred_len, enc_in)

    print("KERNEL_OK")
</pallas_src>

<mosaic_0001>
module attributes {stable_mosaic.version = 11 : i64} {
  func.func @_decomp_kernel(%arg0: i32, %arg1: memref<1x8x4xf32, #tpu.memory_space<vmem>>, %arg2: memref<1x8x4xf32, #tpu.memory_space<vmem>>, %arg3: memref<1x8x4xf32, #tpu.memory_space<vmem>>) attributes {dimension_semantics = [#tpu.dimension_semantics<parallel>], iteration_bounds = array<i64: 2>, scalar_prefetch = 0 : i64, scratch_operands = 0 : i64, tpu.core_type = #tpu.core_type<tc>, window_params = [{transform_indices = @transform_0, window_bounds = array<i64: 1, 8, 4>}, {transform_indices = @transform_1, window_bounds = array<i64: 1, 8, 4>}, {transform_indices = @transform_2, window_bounds = array<i64: 1, 8, 4>}]} {
    %c0 = arith.constant 0 : index
    %c0_0 = arith.constant 0 : index
    %c0_1 = arith.constant 0 : index
    %0 = vector.load %arg1[%c0, %c0_0, %c0_1] : memref<1x8x4xf32, #tpu.memory_space<vmem>>, vector<1x8x4xf32>
    %1 = vector.shape_cast %0 : vector<1x8x4xf32> to vector<8x4xf32>
    %2 = vector.extract_strided_slice %1 {offsets = [0, 0], sizes = [1, 4], strides = [1, 1]} : vector<8x4xf32> to vector<1x4xf32>
    %3 = vector.shape_cast %2 : vector<1x4xf32> to vector<1x4xf32>
    %4 = vector.broadcast %3 : vector<1x4xf32> to vector<2x4xf32>
    %5 = vector.extract_strided_slice %1 {offsets = [7, 0], sizes = [1, 4], strides = [1, 1]} : vector<8x4xf32> to vector<1x4xf32>
    %6 = vector.shape_cast %5 : vector<1x4xf32> to vector<1x4xf32>
    %7 = vector.broadcast %6 : vector<1x4xf32> to vector<2x4xf32>
    %8 = tpu.concatenate %4, %1, %7 in 0 : vector<2x4xf32>, vector<8x4xf32>, vector<2x4xf32> -> vector<12x4xf32>
    %9 = vector.extract_strided_slice %8 {offsets = [0, 0], sizes = [8, 4], strides = [1, 1]} : vector<12x4xf32> to vector<8x4xf32>
    %10 = vector.extract_strided_slice %8 {offsets = [1, 0], sizes = [8, 4], strides = [1, 1]} : vector<12x4xf32> to vector<8x4xf32>
    %11 = arith.addf %9, %10 : vector<8x4xf32>
    %12 = vector.extract_strided_slice %8 {offsets = [2, 0], sizes = [8, 4], strides = [1, 1]} : vector<12x4xf32> to vector<8x4xf32>
    %13 = arith.addf %11, %12 : vector<8x4xf32>
    %14 = vector.extract_strided_slice %8 {offsets = [3, 0], sizes = [8, 4], strides = [1, 1]} : vector<12x4xf32> to vector<8x4xf32>
    %15 = arith.addf %13, %14 : vector<8x4xf32>
    %16 = vector.extract_strided_slice %8 {offsets = [4, 0], sizes = [8, 4], strides = [1, 1]} : vector<12x4xf32> to vector<8x4xf32>
    %17 = arith.addf %15, %16 : vector<8x4xf32>
    %cst = arith.constant 2.000000e-01 : f32
    %18 = vector.broadcast %cst : f32 to vector<8x4xf32>
    %19 = arith.mulf %17, %18 : vector<8x4xf32>
    %c0_2 = arith.constant 0 : index
    %c0_3 = arith.constant 0 : index
    %c0_4 = arith.constant 0 : index
    %20 = vector.load %arg3[%c0_2, %c0_3, %c0_4] : memref<1x8x4xf32, #tpu.memory_space<vmem>>, vector<1x8x4xf32>
    %21 = vector.shape_cast %20 : vector<1x8x4xf32> to vector<8x4xf32>
    %22 = vector.shape_cast %19 : vector<8x4xf32> to vector<1x8x4xf32>
    tpu.vector_store %arg3[%c0_2, %c0_3, %c0_4], %22 {strides = array<i32>} : memref<1x8x4xf32, #tpu.memory_space<vmem>>, vector<1x8x4xf32>,
    %23 = arith.subf %1, %19 : vector<8x4xf32>
    %c0_5 = arith.constant 0 : index
    %c0_6 = arith.constant 0 : index
    %c0_7 = arith.constant 0 : index
    %24 = vector.load %arg2[%c0_5, %c0_6, %c0_7] : memref<1x8x4xf32, #tpu.memory_space<vmem>>, vector<1x8x4xf32>
    %25 = vector.shape_cast %24 : vector<1x8x4xf32> to vector<8x4xf32>
    %26 = vector.shape_cast %23 : vector<8x4xf32> to vector<1x8x4xf32>
    tpu.vector_store %arg2[%c0_5, %c0_6, %c0_7], %26 {strides = array<i32>} : memref<1x8x4xf32, #tpu.memory_space<vmem>>, vector<1x8x4xf32>,
    return
  }
  func.func @transform_0(%arg0: i32) -> (i32, i32, i32) {
    %c0_i32 = arith.constant 0 : i32
    %c0_i32_0 = arith.constant 0 : i32
    %c0_i32_1 = arith.constant 0 : i32
    return %arg0, %c0_i32, %c0_i32_0 : i32, i32, i32
  }
  func.func @transform_1(%arg0: i32) -> (i32, i32, i32) {
    %c0_i32 = arith.constant 0 : i32
    %c0_i32_0 = arith.constant 0 : i32
    %c0_i32_1 = arith.constant 0 : i32
    return %arg0, %c0_i32, %c0_i32_0 : i32, i32, i32
  }
  func.func @transform_2(%arg0: i32) -> (i32, i32, i32) {
    %c0_i32 = arith.constant 0 : i32
    %c0_i32_0 = arith.constant 0 : i32
    %c0_i32_1 = arith.constant 0 : i32
    return %arg0, %c0_i32, %c0_i32_0 : i32, i32, i32
  }
}

</mosaic_0001>

<bundles_post_ra>
// kernel: tpu_custom_call.1
= control target key start
LH: loop header
LB: loop body
LE: loop exit
PB: predicated region body
PF: predicated region fallthrough
CT: control target
= control target key end

     0   :  { %s315_s9 = smov 0   ;;  %s340_s0 = inlined_call_operand.vmem [shape: f32[2,8,4], index: 0, kind: input, shape index: {}]   ;;  %s341_s1 = inlined_call_operand.vmem [shape: f32[2,8,4], index: 1, kind: output, shape index: {0}]   ;;  %s342_s2 = inlined_call_operand.vmem [shape: f32[2,8,4], index: 2, kind: output, shape index: {1}]  }
   0x1 LB: > { %s274_s10 = sadd.s32 4294967295, %s298_s9   ;;  %p278_p0 = scmp.ge.s32.totalorder %s298_s9, 1  ;;  %s298_s9 = sphi %s315_s9, %s13_s9  }
   0x2   : > { %p114_p1 = scmp.lt.s32.totalorder %s298_s9, 3 }
   0x4   : > { %p115_p2 = pnand %p278_p0, %p114_p1 }
   0x5   : > { %p138_p3 = scmp.lt.s32.totalorder (!%p115_p2), %s274_s10, 1 }
   0x6   : > { %118 = sbr.rel (%p115_p2) target bundleno = 34 (0x22), region = 24 }
   0xb   : > { %s344_s10 = smov (!%p138_p3, %s274_s10), 1  ;;  %vm156_vm0 = vcmask 1041408   ;;  %vm161_vm1 = vcmask 1046528   ;;  %vm167_vm2 = vcmask 1045504   ;;  %vm173_vm3 = vcmask 1044480  }
   0xc   : > { %s323_s11 = sshll.u32 %s344_s10, 3  ;;  %vm179_vm4 = vcmask 1043456   ;;  %vm186_vm5 = vcmask 31744  }
   0xd   : > { %s141_s14 = scalar_lea.vmem %s340_s0, %s323_s11  ;;  %s149_s17 = scalar_lea.vmem %s342_s2, %s323_s11 }
   0xe   : > { %v150_v0 = vld [vmem:[%s141_s14] sm:$0xff]  ;;  %s145_s20 = scalar_lea.vmem %s341_s1, %s323_s11 }
   0xf   : > { %v151_v1 = vperm.slane %v150_v0, 0  ;;  %v152_v2 = vperm.slane %v150_v0, 7  ;;  %v154_v3 = vrot.slane %v150_v0, 6 }
  0x11   : > { %v157_v4 = vsel %vm156_vm0, %v151_v1, %v154_v3  ;;  %v158_v5 = vsel %vm156_vm0, %v154_v3, %v152_v2 }
  0x12   : > { %v162_v6 = vrot.slane %v157_v4, 1  ;;  %v163_v7 = vrot.slane %v158_v5, 1  ;;  %v168_v8 = vrot.slane %v157_v4, 2  ;;  %v169_v9 = vrot.slane %v158_v5, 2 }
  0x13   : > { %v174_v10 = vrot.slane %v157_v4, 3  ;;  %v175_v11 = vrot.slane %v158_v5, 3  ;;  %v180_v14 = vrot.slane %v157_v4, 4  ;;  %v181_v15 = vrot.slane %v158_v5, 4 }
  0x14   : > { %v164_v12 = vsel %vm161_vm1, %v162_v6, %v163_v7  ;;  %v170_v13 = vsel %vm167_vm2, %v168_v8, %v169_v9 }
  0x15   : > { %v166_v16 = vadd.f32 %v164_v12, %v157_v4  ;;  %v176_v17 = vsel %vm173_vm3, %v174_v10, %v175_v11  ;;  %v182_v19 = vsel %vm179_vm4, %v180_v14, %v181_v15 }
  0x17   : > { %v172_v18 = vadd.f32 %v170_v13, %v166_v16 }
  0x19   : > { %v178_v20 = vadd.f32 %v176_v17, %v172_v18 }
  0x1b   : > { %v184_v21 = vadd.f32 %v182_v19, %v178_v20 }
  0x1d   : > { %v185_v22 = vmul.f32 0.2, %v184_v21 }
  0x1f   : > { %187 = vst.msk [vmem:[%s149_s17] sm:$0xff] %vm186_vm5, %v185_v22  ;;  %v188_v23 = vsub.f32 %v150_v0, %v185_v22 }
  0x21   : > { %189 = vst.msk [vmem:[%s145_s20] sm:$0xff] %vm186_vm5, %v188_v23 }
  0x22 PF: > { %s13_s9 = sadd.s32 1, %s298_s9  }
  0x23   : > { %p10_p4 = scmp.ge.s32.totalorder %s13_s9, 4  }
  0x25   :  { %12 = sbr.rel (!%p10_p4) target bundleno = 1 (0x1), region = 66 }

</bundles_post_ra>
